<compile_context>
chip_gen: v7x
topology: tpu7x:2x2x1
jax: 0.10.0
libtpu: 0.0.40
codegen_flags: <defaults>
</compile_context>

<pallas_src>
import functools

import jax
import jax.numpy as jnp
from jax.experimental import pallas as pl
from jax.experimental.pallas import tpu as pltpu

LANES = 128            # TPU lane width; all feature dims zero-padded to this.
ROW_PAD = 16           # batch padded to a multiple of 16 (bf16 sublane packing)
DEFAULT_TILE_B = 512   # ~85% of HBM roofline in tile sweeps; clamped to batch.


def mlp_kernel(x_ref, w_ref, b_ref, o_ref):
    """x_ref: (tile_b,128) bf16, w_ref: (3,128,128) bf16, b_ref: (3,1,128) f32,
    o_ref: (tile_b,128) bf16."""
    # Hidden layer 1: Linear + ReLU (bf16 MXU inputs, f32 accumulate/epilogue).
    h = jnp.dot(x_ref[...], w_ref[0], preferred_element_type=jnp.float32)
    h = jnp.maximum(h + b_ref[0], 0.0)
    # Hidden layer 2: Linear + ReLU.
    h = jnp.dot(h.astype(jnp.bfloat16), w_ref[1], preferred_element_type=jnp.float32)
    h = jnp.maximum(h + b_ref[1], 0.0)
    # Output layer: Linear + ReLU (apply_relu_output=True in the source module).
    y = jnp.dot(h.astype(jnp.bfloat16), w_ref[2], preferred_element_type=jnp.float32)
    o_ref[...] = jnp.maximum(y + b_ref[2], 0.0).astype(o_ref.dtype)


def pack_params(params):
    """Pack per-layer (w:(in,out) f32, b:(out,) f32) into two padded slabs.

    Returns:
      w_slab: (L, 128, 128) bf16, layer i's weight in [:in_i, :out_i], rest 0.
      b_slab: (L, 1, 128)  f32,  layer i's bias  in [0, :out_i],      rest 0.
    """
    n = len(params)
    w_slab = jnp.zeros((n, LANES, LANES), jnp.float32)
    b_slab = jnp.zeros((n, 1, LANES), jnp.float32)
    for i, (w, b) in enumerate(params):
        k, m = w.shape
        w_slab = w_slab.at[i, :k, :m].set(w)
        b_slab = b_slab.at[i, 0, :m].set(jnp.reshape(b, (-1,)))
    return w_slab.astype(jnp.bfloat16), b_slab


def pad_activations(x):
    """One-time data-prep: lane-dense (batch_pad, 128) bf16 slab.

    Do this ONCE upstream (not per forward call) so the mem-bound kernel is
    not preceded by an extra full-slab HBM copy every step.
    """
    batch, feat = x.shape
    batch_pad = pl.cdiv(batch, ROW_PAD) * ROW_PAD
    x_pad = jnp.zeros((batch_pad, LANES), jnp.bfloat16)
    return x_pad.at[:batch, :feat].set(x.astype(jnp.bfloat16))


@functools.partial(jax.jit, static_argnames=("tile_b",))
def mlp_forward_padded(x_pad, w_slab, b_slab, *, tile_b=DEFAULT_TILE_B):
    """Hot path: takes an already lane-dense padded bf16 slab, returns the
    padded bf16 output slab. Contains only the pallas_call (no pad/slice)."""
    batch_pad = x_pad.shape[0]
    num_layers = w_slab.shape[0]
    tile_b = min(tile_b, batch_pad)          # small batch -> single grid step
    grid = (pl.cdiv(batch_pad, tile_b),)     # large batch -> >=2 tiles (v7x TCs)

    return pl.pallas_call(
        mlp_kernel,
        out_shape=jax.ShapeDtypeStruct((batch_pad, LANES), jnp.bfloat16),
        grid_spec=pltpu.PrefetchScalarGridSpec(
            num_scalar_prefetch=0,
            grid=grid,
            in_specs=[
                # Activation tiles stream through the grid (pipelined).
                pl.BlockSpec((tile_b, LANES), lambda i: (i, 0)),
                # Weight / bias slabs: same block every step -> fetched once,
                # VMEM-resident across the whole grid.
                pl.BlockSpec((num_layers, LANES, LANES), lambda i: (0, 0, 0)),
                pl.BlockSpec((num_layers, 1, LANES), lambda i: (0, 0, 0)),
            ],
            # Lane-dense (tile_b, 128) output tile -> unmasked full-width stores.
            out_specs=pl.BlockSpec((tile_b, LANES), lambda i: (i, 0)),
        ),
        compiler_params=pltpu.CompilerParams(
            # Independent batch tiles: megacore-shardable (2 TCs on v7x).
            dimension_semantics=("parallel",),
            # Footprint is ~1-2 MiB even at tile_b=512; well under every chip.
            vmem_limit_bytes=32 * 1024 * 1024,
        ),
    )(x_pad, w_slab, b_slab)


def mlp_forward(x, w_slab, b_slab, *, out_size, tile_b=DEFAULT_TILE_B):
    """Convenience one-shot wrapper (pads, runs kernel, slices). For repeated
    calls, pad once with pad_activations() and call mlp_forward_padded()."""
    batch = x.shape[0]
    x_pad = pad_activations(x)
    out_pad = mlp_forward_padded(x_pad, w_slab, b_slab, tile_b=tile_b)
    return out_pad[:batch, :out_size].astype(jnp.float32)


def init_linear(key, in_features, out_features):
    """Mimics torch.nn.Linear default init: U[-1/sqrt(in), 1/sqrt(in)]."""
    kw, kb = jax.random.split(key)
    bound = 1.0 / (in_features ** 0.5)
    w = jax.random.uniform(kw, (in_features, out_features), jnp.float32, -bound, bound)
    b = jax.random.uniform(kb, (out_features,), jnp.float32, -bound, bound)
    return w, b


def mlp_reference_f32(x, params):
    """Pure-f32 reference (ReLU on every layer incl. output)."""
    h = x
    for (w, b) in params:
        h = jnp.maximum(h @ w + b, 0.0)
    return h


def mlp_reference_bf16(x, params):
    """Reference matching the kernel's precision path exactly:
    bf16 MXU inputs, f32 accumulation, f32 bias+ReLU, bf16 between layers."""
    h = x.astype(jnp.bfloat16)
    for (w, b) in params:
        h = jnp.dot(h, w.astype(jnp.bfloat16), preferred_element_type=jnp.float32) + b
        h = jnp.maximum(h, 0.0).astype(jnp.bfloat16)
    return h.astype(jnp.float32)


# TODO(synk): the module's pandas-based predict(df) / CSV loading is host-side
# glue with no kernel equivalent; only the forward pass is implemented.
# TODO(synk): if this MLP ever runs at very large batch and becomes purely
# HBM-bound, pack several logical samples per 128-lane row to undo the
# 32x/64x lane-padding inflation of the 4-wide input / 2-wide output.

if __name__ == "__main__":
    # Sizes consistent with the module: hidden_sizes = [16, 8].
    batch = 128
    input_size = 4
    hidden_sizes = [16, 8]
    output_size = 2

    key = jax.random.PRNGKey(0)
    k_x, k1, k2, k3 = jax.random.split(key, 4)

    x = jax.random.normal(k_x, (batch, input_size), dtype=jnp.float32)
    params = [
        init_linear(k1, input_size, hidden_sizes[0]),
        init_linear(k2, hidden_sizes[0], hidden_sizes[1]),
        init_linear(k3, hidden_sizes[1], output_size),
    ]
    w_slab, b_slab = pack_params(params)

    # Production-style path: pad once, then call the jitted padded forward.
    x_pad = pad_activations(x)
    out_pad = mlp_forward_padded(x_pad, w_slab, b_slab)   # single (128,128) tile
    out_pad = jax.block_until_ready(out_pad)
    out = out_pad[:batch, :output_size].astype(jnp.float32)
    assert out.shape == (batch, output_size)

    # Convenience wrapper gives the same result.
    out2 = jax.block_until_ready(mlp_forward(x, w_slab, b_slab, out_size=output_size))
    assert jnp.array_equal(out, out2)

    # Check against a reference that matches the kernel's precision path.
    ref_bf16 = mlp_reference_bf16(x, params)[:, :output_size]
    assert jnp.allclose(out, ref_bf16, atol=2e-2, rtol=2e-2), \
        float(jnp.max(jnp.abs(out - ref_bf16)))

    # Loose sanity check against pure-f32 math (bf16 I/O + MXU rounding only).
    ref_f32 = mlp_reference_f32(x, params)
    assert jnp.allclose(out, ref_f32, atol=1e-1, rtol=1e-1), \
        float(jnp.max(jnp.abs(out - ref_f32)))

    print("KERNEL_OK")
</pallas_src>

<mosaic_0001>
module attributes {stable_mosaic.version = 11 : i64} {
  func.func @mlp_kernel(%arg0: i32, %arg1: memref<128x128xbf16, #tpu.memory_space<vmem>>, %arg2: memref<3x128x128xbf16, #tpu.memory_space<vmem>>, %arg3: memref<3x1x128xf32, #tpu.memory_space<vmem>>, %arg4: memref<128x128xbf16, #tpu.memory_space<vmem>>) attributes {dimension_semantics = [#tpu.dimension_semantics<parallel>], iteration_bounds = array<i64: 1>, scalar_prefetch = 0 : i64, scratch_operands = 0 : i64, tpu.core_type = #tpu.core_type<tc>, window_params = [{transform_indices = @transform_0, window_bounds = array<i64: 128, 128>}, {pipeline_mode = #tpu.pipeline_mode<synchronous>, transform_indices = @transform_1, window_bounds = array<i64: 3, 128, 128>}, {pipeline_mode = #tpu.pipeline_mode<synchronous>, transform_indices = @transform_2, window_bounds = array<i64: 3, 1, 128>}, {transform_indices = @transform_3, window_bounds = array<i64: 128, 128>}]} {
    %c0 = arith.constant 0 : index
    %c0_0 = arith.constant 0 : index
    %0 = vector.load %arg1[%c0, %c0_0] : memref<128x128xbf16, #tpu.memory_space<vmem>>, vector<128x128xbf16>
    %c0_1 = arith.constant 0 : index
    %c0_2 = arith.constant 0 : index
    %c0_3 = arith.constant 0 : index
    %1 = vector.load %arg2[%c0_1, %c0_2, %c0_3] : memref<3x128x128xbf16, #tpu.memory_space<vmem>>, vector<1x128x128xbf16>
    %2 = vector.shape_cast %1 : vector<1x128x128xbf16> to vector<128x128xbf16>
    %cst = arith.constant dense<0.000000e+00> : vector<128x128xf32>
    %3 = tpu.matmul %0, %2, %cst {dimension_numbers = #tpu.dot_dimension_numbers<[1], [0], [0], [1], [0, 0, 1, 1], [], []>} : vector<128x128xbf16>, vector<128x128xbf16>, vector<128x128xf32> -> vector<128x128xf32>
    %c0_4 = arith.constant 0 : index
    %c0_5 = arith.constant 0 : index
    %c0_6 = arith.constant 0 : index
    %4 = vector.load %arg3[%c0_4, %c0_5, %c0_6] : memref<3x1x128xf32, #tpu.memory_space<vmem>>, vector<1x1x128xf32>
    %5 = vector.shape_cast %4 : vector<1x1x128xf32> to vector<1x128xf32>
    %6 = vector.broadcast %5 : vector<1x128xf32> to vector<128x128xf32>
    %7 = arith.addf %3, %6 : vector<128x128xf32>
    %cst_7 = arith.constant 0.000000e+00 : f32
    %8 = vector.broadcast %cst_7 : f32 to vector<128x128xf32>
    %9 = arith.maximumf %7, %8 : vector<128x128xf32>
    %10 = arith.truncf %9 : vector<128x128xf32> to vector<128x128xbf16>
    %c1 = arith.constant 1 : index
    %c0_8 = arith.constant 0 : index
    %c0_9 = arith.constant 0 : index
    %11 = vector.load %arg2[%c1, %c0_8, %c0_9] : memref<3x128x128xbf16, #tpu.memory_space<vmem>>, vector<1x128x128xbf16>
    %12 = vector.shape_cast %11 : vector<1x128x128xbf16> to vector<128x128xbf16>
    %cst_10 = arith.constant dense<0.000000e+00> : vector<128x128xf32>
    %13 = tpu.matmul %10, %12, %cst_10 {dimension_numbers = #tpu.dot_dimension_numbers<[1], [0], [0], [1], [0, 0, 1, 1], [], []>} : vector<128x128xbf16>, vector<128x128xbf16>, vector<128x128xf32> -> vector<128x128xf32>
    %c1_11 = arith.constant 1 : index
    %c0_12 = arith.constant 0 : index
    %c0_13 = arith.constant 0 : index
    %14 = vector.load %arg3[%c1_11, %c0_12, %c0_13] : memref<3x1x128xf32, #tpu.memory_space<vmem>>, vector<1x1x128xf32>
    %15 = vector.shape_cast %14 : vector<1x1x128xf32> to vector<1x128xf32>
    %16 = vector.broadcast %15 : vector<1x128xf32> to vector<128x128xf32>
    %17 = arith.addf %13, %16 : vector<128x128xf32>
    %cst_14 = arith.constant 0.000000e+00 : f32
    %18 = vector.broadcast %cst_14 : f32 to vector<128x128xf32>
    %19 = arith.maximumf %17, %18 : vector<128x128xf32>
    %20 = arith.truncf %19 : vector<128x128xf32> to vector<128x128xbf16>
    %c2 = arith.constant 2 : index
    %c0_15 = arith.constant 0 : index
    %c0_16 = arith.constant 0 : index
    %21 = vector.load %arg2[%c2, %c0_15, %c0_16] : memref<3x128x128xbf16, #tpu.memory_space<vmem>>, vector<1x128x128xbf16>
    %22 = vector.shape_cast %21 : vector<1x128x128xbf16> to vector<128x128xbf16>
    %cst_17 = arith.constant dense<0.000000e+00> : vector<128x128xf32>
    %23 = tpu.matmul %20, %22, %cst_17 {dimension_numbers = #tpu.dot_dimension_numbers<[1], [0], [0], [1], [0, 0, 1, 1], [], []>} : vector<128x128xbf16>, vector<128x128xbf16>, vector<128x128xf32> -> vector<128x128xf32>
    %c2_18 = arith.constant 2 : index
    %c0_19 = arith.constant 0 : index
    %c0_20 = arith.constant 0 : index
    %24 = vector.load %arg3[%c2_18, %c0_19, %c0_20] : memref<3x1x128xf32, #tpu.memory_space<vmem>>, vector<1x1x128xf32>
    %25 = vector.shape_cast %24 : vector<1x1x128xf32> to vector<1x128xf32>
    %26 = vector.broadcast %25 : vector<1x128xf32> to vector<128x128xf32>
    %27 = arith.addf %23, %26 : vector<128x128xf32>
    %cst_21 = arith.constant 0.000000e+00 : f32
    %28 = vector.broadcast %cst_21 : f32 to vector<128x128xf32>
    %29 = arith.maximumf %27, %28 : vector<128x128xf32>
    %30 = arith.truncf %29 : vector<128x128xf32> to vector<128x128xbf16>
    %c0_22 = arith.constant 0 : index
    %c0_23 = arith.constant 0 : index
    %31 = vector.load %arg4[%c0_22, %c0_23] : memref<128x128xbf16, #tpu.memory_space<vmem>>, vector<128x128xbf16>
    tpu.vector_store %arg4[%c0_22, %c0_23], %30 {strides = array<i32>} : memref<128x128xbf16, #tpu.memory_space<vmem>>, vector<128x128xbf16>,
    return
  }
  func.func @transform_0(%arg0: i32) -> (i32, i32) {
    %c0_i32 = arith.constant 0 : i32
    %c0_i32_0 = arith.constant 0 : i32
    return %arg0, %c0_i32 : i32, i32
  }
  func.func @transform_1(%arg0: i32) -> (i32, i32, i32) {
    %c0_i32 = arith.constant 0 : i32
    %c0_i32_0 = arith.constant 0 : i32
    %c0_i32_1 = arith.constant 0 : i32
    %c0_i32_2 = arith.constant 0 : i32
    return %c0_i32, %c0_i32_0, %c0_i32_1 : i32, i32, i32
  }
  func.func @transform_2(%arg0: i32) -> (i32, i32, i32) {
    %c0_i32 = arith.constant 0 : i32
    %c0_i32_0 = arith.constant 0 : i32
    %c0_i32_1 = arith.constant 0 : i32
    %c0_i32_2 = arith.constant 0 : i32
    return %c0_i32, %c0_i32_0, %c0_i32_1 : i32, i32, i32
  }
  func.func @transform_3(%arg0: i32) -> (i32, i32) {
    %c0_i32 = arith.constant 0 : i32
    %c0_i32_0 = arith.constant 0 : i32
    return %arg0, %c0_i32 : i32, i32
  }
}

</mosaic_0001>

<bundles_post_ra>
// kernel: mlp_forward_padded.1
= control target key start
LH: loop header
LB: loop body
LE: loop exit
PB: predicated region body
PF: predicated region fallthrough
CT: control target
= control target key end

     0   :  { %8 = vsyncpa [#allocation3], 0  ;;  %s1278_s0 = inlined_call_operand.hbm [shape: bf16[128,128], index: 0, kind: input, shape index: {}]   ;;  %s1279_s1 = inlined_call_operand.hbm [shape: bf16[3,128,128], index: 1, kind: input, shape index: {}]   ;;  %s1280_s2 = inlined_call_operand.vmem [shape: f32[3,1,128], index: 2, kind: input, shape index: {}]   ;;  %s1281_s3 = inlined_call_operand.hbm [shape: bf16[128,128], index: 3, kind: output, shape index: {}]  }
   0x1   :  { %9 = vsyncpa [#allocation6], 0 }
   0x2   :  { %10 = vsyncpa [#allocation4], 0  ;;  %s1163_s12 = smov [#allocation2]   ;;  %s1091_s16 = scalar_lea.hbm %s1278_s0, 1024 }
   0x3   :  { %s16_s13 = sshll.u32 %s1163_s12, 4  ;;  %p1092_p0 = scmp.ne.s32.totalorder %s1278_s0, %s1091_s16  ;;  %s17_s13 = int_to_ptr.vmem [resolvable:$true] %s16_s13 }
   0x4   :  { %p1095_p1 = scmp.lt.u32.totalorder %s1091_s16, %s1278_s0 }
   0x6   :  { %p1097_p2 = pnand %p1095_p1, %p1092_p0 }
   0x8   :  { %1100 = shalt.err (!%p1097_p2)
}
   0x9   :  { %s1101_s21 = scalar_lea.vmem %s17_s13, 1024  ;;  %p1106_p4 = scmp.lt.s32.totalorder %s17_s13, %s17_s13 }
   0xa   :  { %p1102_p3 = scmp.ne.s32.totalorder %s17_s13, %s1101_s21  ;;  %p1107_p5 = scmp.lt.s32.totalorder %s1101_s21, %s1101_s21 }
   0xc   :  { %p1108_p6 = por %p1107_p5, %p1106_p4 }
   0xe   :  { %p1109_p7 = pnand %p1108_p6, %p1102_p3 }
  0x10   :  { %1112 = shalt.err (!%p1109_p7)
}
  0x11   :  { %s1164_s22 = smov 64   ;;  %s1165_s23 = smov 4  }
  0x12   :  { %22 = dma.hbm_to_vmem [thread:$0]  %s1278_s0, 1024, %s17_s13, [#allocation3], %s1164_s22, %s1164_s22, %s1165_s23  }
  0x13   :  { %s1166_s26 = smov [#allocation5]   ;;  %s1113_s30 = scalar_lea.hbm %s1279_s1, 3072 }
  0x14   :  { %s28_s27 = sshll.u32 %s1166_s26, 4  ;;  %p1114_p8 = scmp.ne.s32.totalorder %s1279_s1, %s1113_s30  ;;  %s29_s27 = int_to_ptr.vmem [resolvable:$true] %s28_s27 }
  0x15   :  { %p1117_p9 = scmp.lt.u32.totalorder %s1113_s30, %s1279_s1 }
  0x17   :  { %p1119_p10 = pnand %p1117_p9, %p1114_p8 }
  0x19   :  { %1122 = shalt.err (!%p1119_p10)
}
  0x1a   :  { %s1123_s8 = scalar_lea.vmem %s29_s27, 3072  ;;  %p1128_p12 = scmp.lt.s32.totalorder %s29_s27, %s29_s27 }
  0x1b   :  { %p1124_p11 = scmp.ne.s32.totalorder %s29_s27, %s1123_s8  ;;  %p1129_p13 = scmp.lt.s32.totalorder %s1123_s8, %s1123_s8 }
  0x1d   :  { %p1130_p0 = por %p1129_p13, %p1128_p12 }
  0x1f   :  { %p1131_p1 = pnand %p1130_p0, %p1124_p11 }
  0x21   :  { %1134 = shalt.err (!%p1131_p1)
}
  0x22   :  { %34 = dma.hbm_to_vmem [thread:$0]  %s1279_s1, 3072, %s29_s27, [#allocation6], %s1164_s22, %s1164_s22, %s1165_s23  }
  0x23   :  { %1157 = dma.done.wait [#allocation3], 1024  }
  0x24   :  { %1158 = vsyncadd [#allocation3], 4294966272 }
  0x25   :  { %1159 = dma.done.wait [#allocation6], 3072  }
  0x26   :  { %1160 = vsyncadd [#allocation6], 4294964224  ;;  %v1059_v0 = vld [vmem:[#allocation5] sm:$0xff]   ;;  %v1060_v1 = vld [vmem:[#allocation5 + $0x8] sm:$0xff]  }
  0x27   :  { %942 = vmatprep.subr.bf16.mxu0 %v1059_v0  ;;  %v1061_v2 = vld [vmem:[#allocation5 + $0x10] sm:$0xff]   ;;  %v1062_v3 = vld [vmem:[#allocation5 + $0x18] sm:$0xff]   ;;  %v1067_v4 = vld [vmem:[#allocation2] sm:$0xff]  }
  0x28   :  { %943 = vmatpush3.bf16.msra.mxu0 %v1059_v0  ;;  %958 = vmatprep.mubr.bf16.mxu0 %v1067_v4  ;;  %v1063_v5 = vld [vmem:[#allocation5 + $0x20] sm:$0xff]   ;;  %v1064_v6 = vld [vmem:[#allocation5 + $0x28] sm:$0xff]   ;;  %v1065_v9 = vld [vmem:[#allocation5 + $0x30] sm:$0xff]  }
  0x29   :  { %944 = vmatprep.subr.bf16.mxu0 %v1060_v1  ;;  %v1075_v7 = vld [vmem:[#allocation5 + $0x40] sm:$0xff]   ;;  %v1076_v8 = vld [vmem:[#allocation5 + $0x48] sm:$0xff]   ;;  %v1077_v10 = vld [vmem:[#allocation5 + $0x50] sm:$0xff]  }
  0x2a   :  { %974 = vmatprep.subr.bf16.mxu1 %v1075_v7  ;;  %v1066_v11 = vld [vmem:[#allocation5 + $0x38] sm:$0xff]   ;;  %v1079_v13 = vld [vmem:[#allocation5 + $0x60] sm:$0xff]   ;;  %v1068_v14 = vld [vmem:[#allocation2 + $0x8] sm:$0xff]  }
  0x2b   :  { %975 = vmatpush3.bf16.msra.mxu1 %v1075_v7  ;;  %v1078_v12 = vld [vmem:[#allocation5 + $0x58] sm:$0xff]   ;;  %v1069_v15 = vld [vmem:[#allocation2 + $0x10] sm:$0xff]   ;;  %v1080_v16 = vld [vmem:[#allocation5 + $0x68] sm:$0xff]  }
  0x2c   :  { %945 = vmatpush3.bf16.msra.mxu0 %v1060_v1  ;;  %976 = vmatprep.subr.bf16.mxu1 %v1076_v8  ;;  %v1070_v17 = vld [vmem:[#allocation2 + $0x18] sm:$0xff]   ;;  %v1071_v18 = vld [vmem:[#allocation2 + $0x20] sm:$0xff]   ;;  %v1072_v19 = vld [vmem:[#allocation2 + $0x28] sm:$0xff]  }
  0x2d   :  { %946 = vmatprep.subr.bf16.mxu0 %v1061_v2  ;;  %v1073_v20 = vld [vmem:[#allocation2 + $0x30] sm:$0xff]   ;;  %v1074_v21 = vld [vmem:[#allocation2 + $0x38] sm:$0xff]   ;;  %v1083_v24 = vld [vmem:[#allocation5 + $0x80] sm:$0xff]  }
  0x2e   :  { %v1081_v22 = vld [vmem:[#allocation5 + $0x70] sm:$0xff]   ;;  %v1082_v23 = vld [vmem:[#allocation5 + $0x78] sm:$0xff]   ;;  %v1084_v25 = vld [vmem:[#allocation5 + $0x88] sm:$0xff]  }
  0x2f   :  { %977 = vmatpush3.bf16.msra.mxu1 %v1076_v8  ;;  %v1085_v26 = vld [vmem:[#allocation5 + $0x90] sm:$0xff]   ;;  %v1218_v27 = vld [vmem:[#allocation5 + $0x98] sm:$0xff]   ;;  %v1221_v28 = vld [vmem:[#allocation5 + $0xa0] sm:$0xff]  }
  0x30   :  { %947 = vmatpush3.bf16.msra.mxu0 %v1061_v2  ;;  %978 = vmatprep.subr.bf16.mxu1 %v1077_v10  ;;  %v1225_v29 = vld [vmem:[#allocation5 + $0xa8] sm:$0xff]   ;;  %v1233_v30 = vld [vmem:[%s1280_s2] ss:$0 sm:$0xff] }
  0x31   :  { %948 = vmatprep.subr.bf16.mxu0 %v1062_v3 }
  0x33   :  { %979 = vmatpush3.bf16.msra.mxu1 %v1077_v10 }
  0x34   :  { %949 = vmatpush3.bf16.msra.mxu0 %v1062_v3  ;;  %980 = vmatprep.subr.bf16.mxu1 %v1078_v12 }
  0x35   :  { %950 = vmatprep.subr.bf16.mxu0 %v1063_v5 }
  0x37   :  { %981 = vmatpush3.bf16.msra.mxu1 %v1078_v12 }
  0x38   :  { %951 = vmatpush3.bf16.msra.mxu0 %v1063_v5  ;;  %982 = vmatprep.subr.bf16.mxu1 %v1079_v13 }
  0x39   :  { %952 = vmatprep.subr.bf16.mxu0 %v1064_v6 }
  0x3b   :  { %983 = vmatpush3.bf16.msra.mxu1 %v1079_v13 }
  0x3c   :  { %953 = vmatpush3.bf16.msra.mxu0 %v1064_v6  ;;  %984 = vmatprep.subr.bf16.mxu1 %v1080_v16 }
  0x3d   :  { %954 = vmatprep.subr.bf16.mxu0 %v1065_v9 }
  0x3f   :  { %985 = vmatpush3.bf16.msra.mxu1 %v1080_v16 }
  0x40   :  { %955 = vmatpush3.bf16.msra.mxu0 %v1065_v9  ;;  %986 = vmatprep.subr.bf16.mxu1 %v1081_v22 }
  0x41   :  { %956 = vmatprep.subr.bf16.mxu0 %v1066_v11 }
  0x43   :  { %987 = vmatpush3.bf16.msra.mxu1 %v1081_v22 }
  0x44   :  { %957 = vmatpush3.bf16.msra.mxu0 %v1066_v11  ;;  %988 = vmatprep.subr.bf16.mxu1 %v1082_v23 }
  0x45   :  { %1006 = vmatprep.subr.bf16.mxu0 %v1083_v24 }
  0x47   :  { %959 = vmatmul.mubr.bf16.vlgmr.msra.gmra.mrb[0].mxu0 %v1068_v14  ;;  %989 = vmatpush3.bf16.msra.mxu1 %v1082_v23  ;;  %v1089_v23 = vld [vmem:[#allocation5 + $0xb0] sm:$0xff]  }
  0x48   :  { %962 = vmatprep.mubr.bf16.mxu0 %v1069_v15  ;;  %1038 = vmatprep.subr.bf16.mxu1 %v1083_v24 }
  0x49   :  { %1007 = vmatpush3.bf16.msra.mxu0 %v1083_v24 }
  0x4a   :  { %1008 = vmatprep.subr.bf16.mxu0 %v1084_v25 }
  0x4d   :  { %1009 = vmatpush3.bf16.msra.mxu0 %v1084_v25 }
  0x4e   :  { %1010 = vmatprep.subr.bf16.mxu0 %v1085_v26 }
  0x4f   :  { %963 = vmatmul.mubr.bf16.gmra.mrb[4].mxu0 %v1070_v17 }
  0x50   :  { %966 = vmatprep.mubr.bf16.mxu0 %v1071_v18 }
  0x51   :  { %1011 = vmatpush3.bf16.msra.mxu0 %v1085_v26 }
  0x52   :  { %1012 = vmatprep.subr.bf16.mxu0 %v1218_v27 }
  0x55   :  { %1013 = vmatpush3.bf16.msra.mxu0 %v1218_v27 }
  0x56   :  { %1014 = vmatprep.subr.bf16.mxu0 %v1221_v28 }
  0x57   :  { %967 = vmatmul.mubr.bf16.gmra.mrb[8].mxu0 %v1072_v19 }
  0x58   :  { %970 = vmatprep.mubr.bf16.mxu0 %v1073_v20 }
  0x59   :  { %1015 = vmatpush3.bf16.msra.mxu0 %v1221_v28 }
  0x5a   :  { %1016 = vmatprep.subr.bf16.mxu0 %v1225_v29 }
  0x5d   :  { %1017 = vmatpush3.bf16.msra.mxu0 %v1225_v29 }
  0x5e   :  { %1018 = vmatprep.subr.bf16.mxu0 %v1089_v23 }
  0x5f   :  { %971 = vmatmul.mubr.bf16.gmra.mrb[12].mxu0 %v1074_v21 }
  0x61   :  { %1019 = vmatpush3.bf16.msra.mxu0 %v1089_v23 }
 0x11a   :  { %v960_v31 = vpop.f32.mrb[0].mxu0 }
 0x11b   :  { %v222_v32 = vadd.f32 %v960_v31, %v1233_v30  ;;  %v213_v33 = vpop.f32.mrb[1].mxu0 }
 0x11c   :  { %v214_v34 = vadd.f32 %v1233_v30, %v213_v33  ;;  %v961_v35 = vpop.f32.mrb[2].mxu0 }
 0x11d   :  { %v225_v36 = vadd.f32 %v961_v35, %v1233_v30  ;;  %v216_v37 = vpop.f32.mrb[3].mxu0  ;;  %v278_v39 = vmax.f32 %v222_v32, 0.0 }
 0x11e   :  { %v217_v38 = vadd.f32 %v1233_v30, %v216_v37  ;;  %v276_v41 = vmax.f32 %v214_v34, 0.0 }
 0x11f   :  { %v279_v40 = vmax.f32 %v225_v36, 0.0 }
 0x120   :  { %v277_v42 = vmax.f32 %v217_v38, 0.0 }
 0x121   :  { %v293_v43 = vpack.c.bf16 %v279_v40, %v278_v39 }
 0x122   :  { %v964_v44 = vpop.f32.mrb[4].mxu0  ;;  %v292_v45 = vpack.c.bf16 %v277_v42, %v276_v41 }
 0x123   :  { %v238_v46 = vadd.f32 %v964_v44, %v1233_v30  ;;  %v229_v47 = vpop.f32.mrb[5].mxu0 }
 0x124   :  { %v230_v48 = vadd.f32 %v1233_v30, %v229_v47  ;;  %v965_v49 = vpop.f32.mrb[6].mxu0  ;;  %990 = vmatprep.mubr.bf16.mxu1 %v292_v45 }
 0x125   :  { %v241_v50 = vadd.f32 %v965_v49, %v1233_v30  ;;  %v232_v51 = vpop.f32.mrb[7].mxu0  ;;  %991 = vmatmul.mubr.bf16.vlgmr.msra.gmra.mrb[0].mxu1 %v293_v43  ;;  %v282_v53 = vmax.f32 %v238_v46, 0.0 }
 0x126   :  { %v233_v52 = vadd.f32 %v1233_v30, %v232_v51  ;;  %1046 = vmatpush3.bf16.msra.mxu1 %v1083_v24  ;;  %v280_v55 = vmax.f32 %v230_v48, 0.0  ;;  %v1090_v24 = vld [vmem:[#allocation5 + $0xb8] sm:$0xff]  }
 0x127   :  { %v283_v54 = vmax.f32 %v241_v50, 0.0  ;;  %1039 = vmatprep.subr.bf16.mxu1 %v1084_v25  ;;  %1020 = vmatprep.subr.bf16.mxu0 %v1090_v24 }
 0x128   :  { %v281_v56 = vmax.f32 %v233_v52, 0.0  ;;  %1021 = vmatpush3.bf16.msra.mxu0 %v1090_v24 }
 0x129   :  { %v295_v57 = vpack.c.bf16 %v283_v54, %v282_v53 }
 0x12a   :  { %v294_v58 = vpack.c.bf16 %v281_v56, %v280_v55  ;;  %v968_v59 = vpop.f32.mrb[8].mxu0  ;;  %1047 = vmatpush3.bf16.msra.mxu1 %v1084_v25  ;;  %v796_v25 = vld [vmem:[%s1280_s2 + $0x1] ss:$0 sm:$0xff] }
 0x12b   :  { %v254_v60 = vadd.f32 %v968_v59, %v1233_v30  ;;  %v245_v61 = vpop.f32.mrb[9].mxu0  ;;  %1040 = vmatprep.subr.bf16.mxu1 %v1085_v26 }
 0x12c   :  { %v246_v62 = vadd.f32 %v1233_v30, %v245_v61  ;;  %v969_v63 = vpop.f32.mrb[10].mxu0  ;;  %994 = vmatprep.mubr.bf16.mxu1 %v294_v58 }
 0x12d   :  { %v257_v0 = vadd.f32 %v969_v63, %v1233_v30  ;;  %v248_v1 = vpop.f32.mrb[11].mxu0  ;;  %995 = vmatmul.mubr.bf16.gmra.mrb[4].mxu1 %v295_v57  ;;  %v286_v3 = vmax.f32 %v254_v60, 0.0 }
 0x12e   :  { %v249_v2 = vadd.f32 %v1233_v30, %v248_v1  ;;  %1048 = vmatpush3.bf16.msra.mxu1 %v1085_v26  ;;  %v284_v5 = vmax.f32 %v246_v62, 0.0 }
 0x12f   :  { %v287_v4 = vmax.f32 %v257_v0, 0.0  ;;  %1041 = vmatprep.subr.bf16.mxu1 %v1218_v27 }
 0x130   :  { %v285_v6 = vmax.f32 %v249_v2, 0.0 }
 0x131   :  { %v297_v7 = vpack.c.bf16 %v287_v4, %v286_v3 }
 0x132   :  { %v296_v8 = vpack.c.bf16 %v285_v6, %v284_v5  ;;  %v972_v9 = vpop.f32.mrb[12].mxu0  ;;  %1049 = vmatpush3.bf16.msra.mxu1 %v1218_v27 }
 0x133   :  { %v270_v10 = vadd.f32 %v972_v9, %v1233_v30  ;;  %v261_v11 = vpop.f32.mrb[13].mxu0  ;;  %1042 = vmatprep.subr.bf16.mxu1 %v1221_v28 }
 0x134   :  { %v262_v12 = vadd.f32 %v1233_v30, %v261_v11  ;;  %v973_v13 = vpop.f32.mrb[14].mxu0  ;;  %998 = vmatprep.mubr.bf16.mxu1 %v296_v8 }
 0x135   :  { %v273_v14 = vadd.f32 %v973_v13, %v1233_v30  ;;  %v264_v15 = vpop.f32.mrb[15].mxu0  ;;  %999 = vmatmul.mubr.bf16.gmra.mrb[8].mxu1 %v297_v7  ;;  %v290_v17 = vmax.f32 %v270_v10, 0.0 }
 0x136   :  { %v265_v16 = vadd.f32 %v1233_v30, %v264_v15  ;;  %1050 = vmatpush3.bf16.msra.mxu1 %v1221_v28  ;;  %v288_v19 = vmax.f32 %v262_v12, 0.0 }
 0x137   :  { %v291_v18 = vmax.f32 %v273_v14, 0.0  ;;  %1043 = vmatprep.subr.bf16.mxu1 %v1225_v29 }
 0x138   :  { %v289_v20 = vmax.f32 %v265_v16, 0.0 }
 0x139   :  { %v299_v21 = vpack.c.bf16 %v291_v18, %v290_v17  ;;  %v806_v18 = vld [vmem:[%s1280_s2 + $0x2] ss:$0 sm:$0xff]  ;;  %s1167_s2 = smov [#allocation7]  }
 0x13a   :  { %v298_v22 = vpack.c.bf16 %v289_v20, %v288_v19  ;;  %1051 = vmatpush3.bf16.msra.mxu1 %v1225_v29  ;;  %s765_s15 = sshll.u32 %s1167_s2, 4  ;;  %s766_s15 = int_to_ptr.vmem [resolvable:$true] %s765_s15 }
 0x13b   :  { %1044 = vmatprep.subr.bf16.mxu1 %v1089_v23  ;;  %s1135_s16 = scalar_lea.vmem %s766_s15, 1024  ;;  %p1140_p3 = scmp.lt.s32.totalorder %s766_s15, %s766_s15 }
 0x13c   :  { %1002 = vmatprep.mubr.bf16.mxu1 %v298_v22  ;;  %p1136_p2 = scmp.ne.s32.totalorder %s766_s15, %s1135_s16  ;;  %p1141_p4 = scmp.lt.s32.totalorder %s1135_s16, %s1135_s16 }
 0x13d   :  { %1003 = vmatmul.mubr.bf16.gmra.mrb[12].mxu1 %v299_v21 }
 0x13e   :  { %1052 = vmatpush3.bf16.msra.mxu1 %v1089_v23  ;;  %p1142_p5 = por %p1141_p4, %p1140_p3 }
 0x13f   :  { %1045 = vmatprep.subr.bf16.mxu1 %v1090_v24 }
 0x140   :  { %p1143_p6 = pnand %p1142_p5, %p1136_p2 }
 0x142   :  { %1053 = vmatpush3.bf16.msra.mxu1 %v1090_v24 }
 0x1f8   :  { %v992_v26 = vpop.f32.mrb[0].mxu1 }
 0x1f9   :  { %v416_v27 = vadd.f32 %v992_v26, %v796_v25  ;;  %v407_v28 = vpop.f32.mrb[1].mxu1 }
 0x1fa   :  { %v408_v29 = vadd.f32 %v796_v25, %v407_v28  ;;  %v993_v30 = vpop.f32.mrb[2].mxu1 }
 0x1fb   :  { %v419_v31 = vadd.f32 %v993_v30, %v796_v25  ;;  %v410_v32 = vpop.f32.mrb[3].mxu1  ;;  %v472_v34 = vmax.f32 %v416_v27, 0.0 }
 0x1fc   :  { %v411_v33 = vadd.f32 %v796_v25, %v410_v32  ;;  %v470_v36 = vmax.f32 %v408_v29, 0.0 }
 0x1fd   :  { %v473_v35 = vmax.f32 %v419_v31, 0.0 }
 0x1fe   :  { %v471_v37 = vmax.f32 %v411_v33, 0.0 }
 0x1ff   :  { %v487_v38 = vpack.c.bf16 %v473_v35, %v472_v34 }
 0x200   :  { %v486_v39 = vpack.c.bf16 %v471_v37, %v470_v36  ;;  %v996_v40 = vpop.f32.mrb[4].mxu1 }
 0x201   :  { %v432_v41 = vadd.f32 %v996_v40, %v796_v25  ;;  %v423_v42 = vpop.f32.mrb[5].mxu1 }
 0x202   :  { %v424_v43 = vadd.f32 %v796_v25, %v423_v42  ;;  %v997_v44 = vpop.f32.mrb[6].mxu1  ;;  %1022 = vmatprep.mubr.bf16.mxu0 %v486_v39 }
 0x203   :  { %v435_v45 = vadd.f32 %v997_v44, %v796_v25  ;;  %v426_v46 = vpop.f32.mrb[7].mxu1  ;;  %1023 = vmatmul.mubr.bf16.vlgmr.msra.gmra.mrb[16].mxu0 %v487_v38  ;;  %v476_v48 = vmax.f32 %v432_v41, 0.0 }
 0x204   :  { %v427_v47 = vadd.f32 %v796_v25, %v426_v46  ;;  %v474_v50 = vmax.f32 %v424_v43, 0.0 }
 0x205   :  { %v477_v49 = vmax.f32 %v435_v45, 0.0 }
 0x206   :  { %v475_v51 = vmax.f32 %v427_v47, 0.0 }
 0x207   :  { %v489_v52 = vpack.c.bf16 %v477_v49, %v476_v48 }
 0x208   :  { %v488_v53 = vpack.c.bf16 %v475_v51, %v474_v50  ;;  %v1000_v54 = vpop.f32.mrb[8].mxu1 }
 0x209   :  { %v448_v55 = vadd.f32 %v1000_v54, %v796_v25  ;;  %v439_v56 = vpop.f32.mrb[9].mxu1 }
 0x20a   :  { %v440_v57 = vadd.f32 %v796_v25, %v439_v56  ;;  %v1001_v58 = vpop.f32.mrb[10].mxu1  ;;  %1026 = vmatprep.mubr.bf16.mxu0 %v488_v53 }
 0x20b   :  { %v451_v59 = vadd.f32 %v1001_v58, %v796_v25  ;;  %v442_v60 = vpop.f32.mrb[11].mxu1  ;;  %1027 = vmatmul.mubr.bf16.gmra.mrb[20].mxu0 %v489_v52  ;;  %v480_v62 = vmax.f32 %v448_v55, 0.0 }
 0x20c   :  { %v443_v61 = vadd.f32 %v796_v25, %v442_v60  ;;  %v478_v0 = vmax.f32 %v440_v57, 0.0 }
 0x20d   :  { %v481_v63 = vmax.f32 %v451_v59, 0.0 }
 0x20e   :  { %v479_v1 = vmax.f32 %v443_v61, 0.0 }
 0x20f   :  { %v491_v2 = vpack.c.bf16 %v481_v63, %v480_v62 }
 0x210   :  { %v490_v3 = vpack.c.bf16 %v479_v1, %v478_v0  ;;  %v1004_v4 = vpop.f32.mrb[12].mxu1 }
 0x211   :  { %v464_v5 = vadd.f32 %v1004_v4, %v796_v25  ;;  %v455_v6 = vpop.f32.mrb[13].mxu1 }
 0x212   :  { %v456_v7 = vadd.f32 %v796_v25, %v455_v6  ;;  %v1005_v8 = vpop.f32.mrb[14].mxu1  ;;  %1030 = vmatprep.mubr.bf16.mxu1 %v490_v3 }
 0x213   :  { %v467_v9 = vadd.f32 %v1005_v8, %v796_v25  ;;  %v458_v10 = vpop.f32.mrb[15].mxu1  ;;  %1031 = vmatmul.mubr.bf16.vlgmr.msra.gmra.mrb[16].mxu1 %v491_v2  ;;  %v484_v12 = vmax.f32 %v464_v5, 0.0 }
 0x214   :  { %v459_v11 = vadd.f32 %v796_v25, %v458_v10  ;;  %v482_v14 = vmax.f32 %v456_v7, 0.0 }
 0x215   :  { %v485_v13 = vmax.f32 %v467_v9, 0.0 }
 0x216   :  { %v483_v15 = vmax.f32 %v459_v11, 0.0 }
 0x217   :  { %v493_v16 = vpack.c.bf16 %v485_v13, %v484_v12 }
 0x218   :  { %v492_v17 = vpack.c.bf16 %v483_v15, %v482_v14 }
 0x21a   :  { %1034 = vmatprep.mubr.bf16.mxu1 %v492_v17 }
 0x21b   :  { %1035 = vmatmul.mubr.bf16.gmra.mrb[20].mxu1 %v493_v16 }
 0x2d6   :  { %v1024_v19 = vpop.f32.mrb[16].mxu0 }
 0x2d7   :  { %v610_v20 = vadd.f32 %v1024_v19, %v806_v18  ;;  %v601_v21 = vpop.f32.mrb[17].mxu0 }
 0x2d8   :  { %v602_v22 = vadd.f32 %v806_v18, %v601_v21  ;;  %v1025_v23 = vpop.f32.mrb[18].mxu0 }
 0x2d9   :  { %v613_v24 = vadd.f32 %v1025_v23, %v806_v18  ;;  %v604_v26 = vpop.f32.mrb[19].mxu0  ;;  %v666_v27 = vmax.f32 %v610_v20, 0.0 }
 0x2da   :  { %v605_v25 = vadd.f32 %v806_v18, %v604_v26  ;;  %v664_v29 = vmax.f32 %v602_v22, 0.0 }
 0x2db   :  { %v667_v28 = vmax.f32 %v613_v24, 0.0 }
 0x2dc   :  { %v665_v30 = vmax.f32 %v605_v25, 0.0 }
 0x2dd   :  { %v855_v31 = vpack.c.bf16 %v667_v28, %v666_v27 }
 0x2de   :  { %v850_v32 = vpack.c.bf16 %v665_v30, %v664_v29  ;;  %v1028_v33 = vpop.f32.mrb[20].mxu0 }
 0x2df   :  { %887 = vst [vmem:[#allocation7 + $0x8] sm:$0xff] %v855_v31   ;;  %v626_v34 = vadd.f32 %v1028_v33, %v806_v18  ;;  %v617_v35 = vpop.f32.mrb[21].mxu0 }
 0x2e0   :  { %851 = vst [vmem:[#allocation7] sm:$0xff] %v850_v32   ;;  %v618_v36 = vadd.f32 %v806_v18, %v617_v35  ;;  %v1029_v37 = vpop.f32.mrb[22].mxu0 }
 0x2e1   :  { %v629_v38 = vadd.f32 %v1029_v37, %v806_v18  ;;  %v620_v39 = vpop.f32.mrb[23].mxu0  ;;  %v670_v41 = vmax.f32 %v626_v34, 0.0 }
 0x2e2   :  { %v621_v40 = vadd.f32 %v806_v18, %v620_v39  ;;  %v668_v43 = vmax.f32 %v618_v36, 0.0 }
 0x2e3   :  { %v671_v42 = vmax.f32 %v629_v38, 0.0 }
 0x2e4   :  { %v669_v44 = vmax.f32 %v621_v40, 0.0 }
 0x2e5   :  { %v865_v45 = vpack.c.bf16 %v671_v42, %v670_v41 }
 0x2e6   :  { %v860_v46 = vpack.c.bf16 %v669_v44, %v668_v43  ;;  %v1032_v47 = vpop.f32.mrb[16].mxu1 }
 0x2e7   :  { %889 = vst [vmem:[#allocation7 + $0x18] sm:$0xff] %v865_v45   ;;  %v642_v48 = vadd.f32 %v1032_v47, %v806_v18  ;;  %v633_v49 = vpop.f32.mrb[17].mxu1 }
 0x2e8   :  { %888 = vst [vmem:[#allocation7 + $0x10] sm:$0xff] %v860_v46   ;;  %v634_v50 = vadd.f32 %v806_v18, %v633_v49  ;;  %v1033_v51 = vpop.f32.mrb[18].mxu1 }
 0x2e9   :  { %v645_v52 = vadd.f32 %v1033_v51, %v806_v18  ;;  %v636_v53 = vpop.f32.mrb[19].mxu1  ;;  %v674_v55 = vmax.f32 %v642_v48, 0.0 }
 0x2ea   :  { %v637_v54 = vadd.f32 %v806_v18, %v636_v53  ;;  %v672_v57 = vmax.f32 %v634_v50, 0.0 }
 0x2eb   :  { %v675_v56 = vmax.f32 %v645_v52, 0.0 }
 0x2ec   :  { %v673_v58 = vmax.f32 %v637_v54, 0.0 }
 0x2ed   :  { %v875_v59 = vpack.c.bf16 %v675_v56, %v674_v55 }
 0x2ee   :  { %v870_v60 = vpack.c.bf16 %v673_v58, %v672_v57  ;;  %v1036_v61 = vpop.f32.mrb[20].mxu1 }
 0x2ef   :  { %891 = vst [vmem:[#allocation7 + $0x28] sm:$0xff] %v875_v59   ;;  %v658_v62 = vadd.f32 %v1036_v61, %v806_v18  ;;  %v649_v63 = vpop.f32.mrb[21].mxu1 }
 0x2f0   :  { %890 = vst [vmem:[#allocation7 + $0x20] sm:$0xff] %v870_v60   ;;  %v650_v0 = vadd.f32 %v806_v18, %v649_v63  ;;  %v1037_v1 = vpop.f32.mrb[22].mxu1 }
 0x2f1   :  { %v661_v2 = vadd.f32 %v1037_v1, %v806_v18  ;;  %v652_v3 = vpop.f32.mrb[23].mxu1  ;;  %v678_v5 = vmax.f32 %v658_v62, 0.0 }
 0x2f2   :  { %v653_v4 = vadd.f32 %v806_v18, %v652_v3  ;;  %v676_v7 = vmax.f32 %v650_v0, 0.0 }
 0x2f3   :  { %v679_v6 = vmax.f32 %v661_v2, 0.0 }
 0x2f4   :  { %v677_v8 = vmax.f32 %v653_v4, 0.0 }
 0x2f5   :  { %v885_v9 = vpack.c.bf16 %v679_v6, %v678_v5 }
 0x2f6   :  { %v880_v10 = vpack.c.bf16 %v677_v8, %v676_v7 }
 0x2f7   :  { %893 = vst [vmem:[#allocation7 + $0x38] sm:$0xff] %v885_v9  }
 0x2f8   :  { %892 = vst [vmem:[#allocation7 + $0x30] sm:$0xff] %v880_v10  }
 0x2f9   :  { %1146 = shalt.err (!%p1143_p6)
}
 0x2fa   :  { %s1147_s19 = scalar_lea.hbm %s1281_s3, 1024 }
 0x2fb   :  { %p1148_p7 = scmp.ne.s32.totalorder %s1281_s3, %s1147_s19  ;;  %p1151_p8 = scmp.lt.u32.totalorder %s1147_s19, %s1281_s3 }
 0x2fd   :  { %p1153_p9 = pnand %p1151_p8, %p1148_p7 }
 0x2ff   :  { %1156 = shalt.err (!%p1153_p9)
}
 0x300   :  { %771 = dma.vmem_to_hbm [thread:$0]  %s766_s15, 1024, %s1281_s3, [#allocation4], %s1164_s22, %s1164_s22, %s1165_s23  }
 0x301   :  { %1161 = dma.done.wait [#allocation4], 1024  }
 0x302   :  { %1162 = vsyncadd [#allocation4], 4294966272 }
 0x303   :  { %775 = vsyncpa [#allocation3], 1 }
 0x304   :  { %776 = vsyncpa [#allocation6], 1 }
 0x305   :  { %777 = vsyncpa [#allocation4], 1 }

</bundles_post_ra>
